<compile_context>
chip_gen: v7x
topology: tpu7x:2x2x1
jax: 0.10.0
libtpu: 0.0.40
codegen_flags: <defaults>
</compile_context>

<pallas_src>
import functools

import jax
import jax.numpy as jnp
from jax.experimental import pallas as pl
from jax.experimental.pallas import tpu as pltpu


def _round_up(n, m):
    return ((n + m - 1) // m) * m


# ----------------------------------------------------------------------------
# One-time weight packing (hoisted out of the per-call path).
# ----------------------------------------------------------------------------
def prepare_swiglu_weights(w1, w2, w3, *, block_h=512, weight_dtype=None):
    """Pack PyTorch-layout SwiGLU weights once at parameter-load time.

    w1, w3 : (H, E)   nn.Linear (out_features, in_features) layout
    w2     : (E, H)

    Returns (w13_packed, w2_t, th):
      w13_packed : (E, 2*Hp)  per-h-tile interleaved [W1 tile | W3 tile] in
                   plain (K, N) layout -> one up-projection dot per h step.
      w2_t       : (Hp, E)    W2 transposed to (K, N).
      th         : hidden tile used by the packing (multiple of 128).

    Padded hidden units are exactly inert (zero W1/W3 rows and zero W2
    columns), so the result is bit-identical in the unpadded region.
    On v5e/v6e you may pass block_h=768/1024 for fewer, fatter h steps;
    keep 512 (or 256 for E>=8192) on v7x's 64 MiB VMEM.
    """
    assert block_h % 128 == 0
    H, E = w1.shape
    assert w3.shape == (H, E) and w2.shape == (E, H)

    th = min(block_h, _round_up(H, 128))          # multiple of 128
    Hp = _round_up(H, th)
    num_h = Hp // th

    if weight_dtype is not None:
        w1 = w1.astype(weight_dtype)
        w2 = w2.astype(weight_dtype)
        w3 = w3.astype(weight_dtype)

    if Hp != H:
        w1 = jnp.pad(w1, ((0, Hp - H), (0, 0)))
        w3 = jnp.pad(w3, ((0, Hp - H), (0, 0)))
        w2 = jnp.pad(w2, ((0, 0), (0, Hp - H)))

    w1_t = w1.T.reshape(E, num_h, th)             # (E, Hp) tiled along H
    w3_t = w3.T.reshape(E, num_h, th)
    w13 = jnp.stack([w1_t, w3_t], axis=2).reshape(E, 2 * Hp)
    w2_t = w2.T                                   # (Hp, E)
    return w13, w2_t, th


# ----------------------------------------------------------------------------
# Generation-aware tile / VMEM-limit selection.
# ----------------------------------------------------------------------------
def _auto_tiles(M, E, th, x_itemsize, w_itemsize, out_itemsize, block_m=None):
    try:
        vmem_cap = int(pltpu.get_tpu_info().vmem_capacity_bytes)
    except Exception:
        vmem_cap = 64 * 1024 * 1024               # conservative (v7x-sized)
    budget = int(vmem_cap * 0.9) - (2 << 20)      # headroom for compiler scratch

    def residency(tm):
        return (2 * tm * E * x_itemsize           # x row tile, double-buffered
                + 2 * E * (2 * th) * w_itemsize   # fused W1|W3 tile, 2-deep
                + 2 * th * E * w_itemsize         # W2^T tile, 2-deep
                + 2 * tm * E * out_itemsize       # output row tile, 2-deep
                + tm * E * 4)                     # f32 accumulator scratch

    if block_m is None:
        chosen = 16
        # Biggest row tile that fits: large tm => arithmetic intensity per
        # re-streamed weight byte ~ tm FLOP/byte => MXU-bound on all gens.
        for cand in (1024, 768, 512, 384, 256, 192, 128, 64, 32, 16):
            if residency(cand) <= budget:
                chosen = cand
                break
    else:
        chosen = block_m

    # Sublane granule: 8 for f32, 16 for bf16, 32 for 8-bit dtypes.
    granule = max(8, 32 // x_itemsize)
    tm = max(granule, min(chosen, _round_up(M, granule)))
    tm = _round_up(tm, granule)

    resid = residency(tm)
    vmem_limit = int(min(vmem_cap, max(32 << 20, resid + (4 << 20))))
    return tm, vmem_limit


# ----------------------------------------------------------------------------
# Kernel.
# ----------------------------------------------------------------------------
def _swiglu_kernel(x_ref, w13_ref, w2_ref, o_ref, acc_ref, *, th, approx_sigmoid):
    # x_ref:   (tm, E)       activation row tile (resident across the H axis)
    # w13_ref: (E, 2*th)     [W1 | W3] hidden tile, plain (K, N) layout
    # w2_ref:  (th, E)       W2^T hidden tile, plain (K, N) layout
    # o_ref:   (tm, E)       output row tile (resident across the H axis)
    # acc_ref: (tm, E) f32   accumulator over the H grid axis
    h_idx = pl.program_id(1)

    @pl.when(h_idx == 0)
    def _():
        acc_ref[...] = jnp.zeros_like(acc_ref)

    x = x_ref[...]
    # Single fused up-projection: (tm, E) @ (E, 2*th) -> (tm, 2*th), f32 acc.
    up = jnp.dot(x, w13_ref[...], preferred_element_type=jnp.float32)
    h1 = up[:, :th]
    h3 = up[:, th:]

    # SiLU(h1) = h1 * sigmoid(h1) = h1 / (1 + exp(-h1)).
    # exp (and optionally the reciprocal) run on the EUP slot, keeping the
    # gate off the VALU critical path.
    denom = 1.0 + jnp.exp(-h1)
    if approx_sigmoid:
        sig = pl.reciprocal(denom, approx=True)
    else:
        sig = 1.0 / denom
    gated = (h1 * sig) * h3

    # Partial down-projection:  acc += gated @ W2^T[h_tile]  (f32 accumulate).
    acc_ref[...] += jnp.dot(gated.astype(w2_ref.dtype), w2_ref[...],
                            preferred_element_type=jnp.float32)

    @pl.when(h_idx == pl.num_programs(1) - 1)
    def _():
        o_ref[...] = acc_ref[...].astype(o_ref.dtype)


# ----------------------------------------------------------------------------
# Pallas-call wrapper (fast path: pre-packed weights).
# ----------------------------------------------------------------------------
@functools.partial(jax.jit, static_argnames=("block_h", "block_m", "approx_sigmoid"))
def swiglu_ffn_packed(x, w13, w2_t, *, block_h, block_m=None, approx_sigmoid=True):
    """SwiGLU FFN on pre-packed weights (see prepare_swiglu_weights).

    x : (B, S, E);  w13 : (E, 2*Hp);  w2_t : (Hp, E);  block_h == packing th.
    """
    B, S, E = x.shape
    Hp, E2 = w2_t.shape
    th = block_h
    assert E2 == E and w13.shape == (E, 2 * Hp)
    assert th % 128 == 0 and Hp % th == 0

    M = B * S
    out_dtype = x.dtype
    x_isize = jnp.dtype(x.dtype).itemsize
    w_isize = jnp.dtype(w13.dtype).itemsize

    tm, vmem_limit = _auto_tiles(M, E, th, x_isize, w_isize, x_isize, block_m)

    Mp = _round_up(M, tm)
    xf = x.reshape(M, E)
    if Mp != M:
        xf = jnp.pad(xf, ((0, Mp - M), (0, 0)))

    num_m = Mp // tm
    num_h = Hp // th
    grid = (num_m, num_h)

    kernel = functools.partial(_swiglu_kernel, th=th, approx_sigmoid=approx_sigmoid)

    w_bytes = (w13.size + w2_t.size) * w_isize
    cost = pl.CostEstimate(
        flops=2 * Mp * Hp * E * 3,
        transcendentals=Mp * Hp,
        bytes_accessed=int(xf.size * x_isize
                           + num_m * w_bytes
                           + Mp * E * jnp.dtype(out_dtype).itemsize),
    )

    # TODO(synk): for very large E (>= 8192) also tile the contraction (E)
    # axis; here the full E row fits VMEM with the auto-picked tiles.
    # TODO(synk): for decode-like shapes on v7x (num_m == 1) the parallel M
    # axis cannot shard across both TensorCores; shard the H reduction with an
    # explicit cross-core combine instead.
    out = pl.pallas_call(
        kernel,
        out_shape=jax.ShapeDtypeStruct((Mp, E), out_dtype),
        grid_spec=pltpu.PrefetchScalarGridSpec(
            num_scalar_prefetch=0,
            grid=grid,
            in_specs=[
                pl.BlockSpec((tm, E), lambda i, h: (i, 0)),       # x rows
                pl.BlockSpec((E, 2 * th), lambda i, h: (0, h)),   # [W1|W3] tile
                pl.BlockSpec((th, E), lambda i, h: (h, 0)),       # W2^T tile
            ],
            out_specs=pl.BlockSpec((tm, E), lambda i, h: (i, 0)),
            scratch_shapes=[pltpu.VMEM((tm, E), jnp.float32)],
        ),
        compiler_params=pltpu.CompilerParams(
            dimension_semantics=("parallel", "arbitrary"),
            vmem_limit_bytes=vmem_limit),
        cost_estimate=cost,
    )(xf, w13, w2_t)

    if Mp != M:
        out = out[:M]
    return out.reshape(B, S, E)


def feedforward_swiglu(x, w1, w2, w3, *, block_h=512, block_m=None,
                       approx_sigmoid=True, weight_dtype=None):
    """Convenience path from raw PyTorch-layout weights.

    Packs per call; for repeated calls pack once with prepare_swiglu_weights
    and call swiglu_ffn_packed directly.
    """
    w13, w2_t, th = prepare_swiglu_weights(w1, w2, w3, block_h=block_h,
                                           weight_dtype=weight_dtype)
    return swiglu_ffn_packed(x, w13, w2_t, block_h=th, block_m=block_m,
                             approx_sigmoid=approx_sigmoid)


def _reference(x, w1, w2, w3):
    h1 = jnp.einsum("bse,he->bsh", x, w1)
    h3 = jnp.einsum("bse,he->bsh", x, w3)
    g = (h1 * jax.nn.sigmoid(h1)) * h3
    return jnp.einsum("bsh,eh->bse", g, w2)


if __name__ == "__main__":
    # cfg = {'emb_dim': 128}  ->  hidden = int(128 * 1.8) = 230
    emb_dim = 128
    hidden = int(emb_dim * 1.8)
    B, S = 2, 8

    key = jax.random.PRNGKey(0)
    kx, k1, k2, k3 = jax.random.split(key, 4)

    x = jax.random.normal(kx, (B, S, emb_dim), dtype=jnp.float32)
    # nn.Linear default init: U(-1/sqrt(in), 1/sqrt(in)), bias=False.
    b1 = 1.0 / (emb_dim ** 0.5)
    b2 = 1.0 / (hidden ** 0.5)
    w1 = jax.random.uniform(k1, (hidden, emb_dim), minval=-b1, maxval=b1, dtype=jnp.float32)
    w3 = jax.random.uniform(k3, (hidden, emb_dim), minval=-b1, maxval=b1, dtype=jnp.float32)
    w2 = jax.random.uniform(k2, (emb_dim, hidden), minval=-b2, maxval=b2, dtype=jnp.float32)

    y_ref = _reference(x, w1, w2, w3)

    # f32 path (exact sigmoid), weights packed once, checked tightly.
    w13_f32, w2t_f32, th_f32 = prepare_swiglu_weights(w1, w2, w3)
    y = swiglu_ffn_packed(x, w13_f32, w2t_f32, block_h=th_f32, approx_sigmoid=False)
    y = jax.block_until_ready(y)
    assert y.shape == (B, S, emb_dim)
    assert jnp.allclose(y, y_ref, atol=1e-4, rtol=1e-4), "f32 mismatch vs reference"

    # bf16 weights/activations with f32 accumulation + EUP approx sigmoid
    # (the recommended fast path on v6e/v7x); looser tolerance for bf16 inputs.
    w13_bf, w2t_bf, th_bf = prepare_swiglu_weights(w1, w2, w3, weight_dtype=jnp.bfloat16)
    yb = swiglu_ffn_packed(x.astype(jnp.bfloat16), w13_bf, w2t_bf,
                           block_h=th_bf, approx_sigmoid=True)
    yb = jax.block_until_ready(yb)
    assert yb.shape == (B, S, emb_dim)
    assert jnp.allclose(yb.astype(jnp.float32), y_ref, atol=5e-2, rtol=5e-2), \
        "bf16 mismatch vs reference"

    # Convenience (unpacked) path also works.
    yc = feedforward_swiglu(x, w1, w2, w3, approx_sigmoid=False)
    yc = jax.block_until_ready(yc)
    assert jnp.allclose(yc, y_ref, atol=1e-4, rtol=1e-4), "convenience-path mismatch"

    print("KERNEL_OK")
</pallas_src>

<mosaic_0001>
module attributes {stable_mosaic.version = 11 : i64} {
  func.func @_swiglu_kernel(%arg0: i32, %arg1: i32, %arg2: memref<16x128xf32, #tpu.memory_space<vmem>>, %arg3: memref<128x512xf32, #tpu.memory_space<vmem>>, %arg4: memref<256x128xf32, #tpu.memory_space<vmem>>, %arg5: memref<16x128xf32, #tpu.memory_space<vmem>>, %arg6: memref<16x128xf32, #tpu.memory_space<vmem>>) attributes {dimension_semantics = [#tpu.dimension_semantics<parallel>, #tpu.dimension_semantics<arbitrary>], iteration_bounds = array<i64: 1, 1>, scalar_prefetch = 0 : i64, scratch_operands = 1 : i64, tpu.core_type = #tpu.core_type<tc>, window_params = [{transform_indices = @transform_0, window_bounds = array<i64: 16, 128>}, {transform_indices = @transform_1, window_bounds = array<i64: 128, 512>}, {transform_indices = @transform_2, window_bounds = array<i64: 256, 128>}, {transform_indices = @transform_3, window_bounds = array<i64: 16, 128>}]} {
    %c0_i32 = arith.constant 0 : i32
    %0 = arith.cmpi eq, %arg1, %c0_i32 : i32
    %1 = arith.extui %0 : i1 to i32
    %c0_i32_0 = arith.constant 0 : i32
    %2 = arith.cmpi ne, %1, %c0_i32_0 : i32
    scf.if %2 {
      %cst_16 = arith.constant 0.000000e+00 : f32
      %25 = vector.broadcast %cst_16 : f32 to vector<16x128xf32>
      %c0_17 = arith.constant 0 : index
      %c0_18 = arith.constant 0 : index
      %26 = vector.load %arg6[%c0_17, %c0_18] : memref<16x128xf32, #tpu.memory_space<vmem>>, vector<16x128xf32>
      tpu.vector_store %arg6[%c0_17, %c0_18], %25 {strides = array<i32>} : memref<16x128xf32, #tpu.memory_space<vmem>>, vector<16x128xf32>,
    } else {
    }
    %c0 = arith.constant 0 : index
    %c0_1 = arith.constant 0 : index
    %3 = vector.load %arg2[%c0, %c0_1] : memref<16x128xf32, #tpu.memory_space<vmem>>, vector<16x128xf32>
    %c0_2 = arith.constant 0 : index
    %c0_3 = arith.constant 0 : index
    %4 = vector.load %arg3[%c0_2, %c0_3] : memref<128x512xf32, #tpu.memory_space<vmem>>, vector<128x512xf32>
    %cst = arith.constant dense<0.000000e+00> : vector<16x512xf32>
    %5 = tpu.matmul %3, %4, %cst {dimension_numbers = #tpu.dot_dimension_numbers<[1], [0], [0], [1], [0, 0, 1, 1], [], []>} : vector<16x128xf32>, vector<128x512xf32>, vector<16x512xf32> -> vector<16x512xf32>
    %6 = vector.extract_strided_slice %5 {offsets = [0, 0], sizes = [16, 256], strides = [1, 1]} : vector<16x512xf32> to vector<16x256xf32>
    %7 = vector.extract_strided_slice %5 {offsets = [0, 256], sizes = [16, 256], strides = [1, 1]} : vector<16x512xf32> to vector<16x256xf32>
    %cst_4 = arith.constant 0.000000e+00 : f32
    %8 = vector.broadcast %cst_4 : f32 to vector<16x256xf32>
    %9 = arith.subf %8, %6 : vector<16x256xf32>
    %10 = math.exp %9 : vector<16x256xf32>
    %cst_5 = arith.constant 1.000000e+00 : f32
    %11 = vector.broadcast %cst_5 : f32 to vector<16x256xf32>
    %12 = arith.addf %11, %10 : vector<16x256xf32>
    %cst_6 = arith.constant 1.000000e+00 : f32
    %13 = vector.broadcast %cst_6 : f32 to vector<16x256xf32>
    %14 = arith.divf %13, %12 : vector<16x256xf32>
    %15 = arith.mulf %6, %14 : vector<16x256xf32>
    %16 = arith.mulf %15, %7 : vector<16x256xf32>
    %c0_7 = arith.constant 0 : index
    %c0_8 = arith.constant 0 : index
    %17 = vector.load %arg6[%c0_7, %c0_8] : memref<16x128xf32, #tpu.memory_space<vmem>>, vector<16x128xf32>
    %c0_9 = arith.constant 0 : index
    %c0_10 = arith.constant 0 : index
    %18 = vector.load %arg4[%c0_9, %c0_10] : memref<256x128xf32, #tpu.memory_space<vmem>>, vector<256x128xf32>
    %cst_11 = arith.constant dense<0.000000e+00> : vector<16x128xf32>
    %19 = tpu.matmul %16, %18, %cst_11 {dimension_numbers = #tpu.dot_dimension_numbers<[1], [0], [0], [1], [0, 0, 1, 1], [], []>} : vector<16x256xf32>, vector<256x128xf32>, vector<16x128xf32> -> vector<16x128xf32>
    %20 = arith.addf %17, %19 : vector<16x128xf32>
    %c0_12 = arith.constant 0 : index
    %c0_13 = arith.constant 0 : index
    %21 = vector.load %arg6[%c0_12, %c0_13] : memref<16x128xf32, #tpu.memory_space<vmem>>, vector<16x128xf32>
    tpu.vector_store %arg6[%c0_12, %c0_13], %20 {strides = array<i32>} : memref<16x128xf32, #tpu.memory_space<vmem>>, vector<16x128xf32>,
    %c0_i32_14 = arith.constant 0 : i32
    %22 = arith.cmpi eq, %arg1, %c0_i32_14 : i32
    %23 = arith.extui %22 : i1 to i32
    %c0_i32_15 = arith.constant 0 : i32
    %24 = arith.cmpi ne, %23, %c0_i32_15 : i32
    scf.if %24 {
      %c0_16 = arith.constant 0 : index
      %c0_17 = arith.constant 0 : index
      %25 = vector.load %arg6[%c0_16, %c0_17] : memref<16x128xf32, #tpu.memory_space<vmem>>, vector<16x128xf32>
      %c0_18 = arith.constant 0 : index
      %c0_19 = arith.constant 0 : index
      %26 = vector.load %arg5[%c0_18, %c0_19] : memref<16x128xf32, #tpu.memory_space<vmem>>, vector<16x128xf32>
      tpu.vector_store %arg5[%c0_18, %c0_19], %25 {strides = array<i32>} : memref<16x128xf32, #tpu.memory_space<vmem>>, vector<16x128xf32>,
    } else {
    }
    return
  }
  func.func @transform_0(%arg0: i32, %arg1: i32) -> (i32, i32) {
    %c0_i32 = arith.constant 0 : i32
    %c0_i32_0 = arith.constant 0 : i32
    return %arg0, %c0_i32 : i32, i32
  }
  func.func @transform_1(%arg0: i32, %arg1: i32) -> (i32, i32) {
    %c0_i32 = arith.constant 0 : i32
    %c0_i32_0 = arith.constant 0 : i32
    return %c0_i32, %arg1 : i32, i32
  }
  func.func @transform_2(%arg0: i32, %arg1: i32) -> (i32, i32) {
    %c0_i32 = arith.constant 0 : i32
    %c0_i32_0 = arith.constant 0 : i32
    return %arg1, %c0_i32 : i32, i32
  }
  func.func @transform_3(%arg0: i32, %arg1: i32) -> (i32, i32) {
    %c0_i32 = arith.constant 0 : i32
    %c0_i32_0 = arith.constant 0 : i32
    return %arg0, %c0_i32 : i32, i32
  }
}

</mosaic_0001>

<bundles_post_ra>
// kernel: swiglu_ffn_packed.1
= control target key start
LH: loop header
LB: loop body
LE: loop exit
PB: predicated region body
PF: predicated region fallthrough
CT: control target
= control target key end

     0   :  { %8 = vsyncpa [#allocation4], 0  ;;  %s811_s0 = inlined_call_operand.hbm [shape: f32[16,128], index: 0, kind: input, shape index: {}]   ;;  %s812_s1 = inlined_call_operand.hbm [shape: f32[128,512], index: 1, kind: input, shape index: {}]   ;;  %s813_s2 = inlined_call_operand.hbm [shape: f32[256,128], index: 2, kind: input, shape index: {}]   ;;  %s814_s3 = inlined_call_operand.hbm [shape: f32[16,128], index: 3, kind: output, shape index: {}]  }
   0x1   :  { %9 = vsyncpa [#allocation7], 0 }
   0x2   :  { %10 = vsyncpa [#allocation5], 0  ;;  %s721_s12 = smov [#allocation6]   ;;  %s627_s16 = scalar_lea.hbm %s812_s1, 8192 }
   0x3   :  { %s28_s13 = sshll.u32 %s721_s12, 4  ;;  %p628_p0 = scmp.ne.s32.totalorder %s812_s1, %s627_s16  ;;  %s29_s13 = int_to_ptr.vmem [resolvable:$true] %s28_s13 }
   0x4   :  { %p631_p1 = scmp.lt.u32.totalorder %s627_s16, %s812_s1 }
   0x6   :  { %p633_p2 = pnand %p631_p1, %p628_p0 }
   0x8   :  { %636 = shalt.err (!%p633_p2)
}
   0x9   :  { %s637_s21 = scalar_lea.vmem %s29_s13, 8192  ;;  %p642_p4 = scmp.lt.s32.totalorder %s29_s13, %s29_s13 }
   0xa   :  { %p638_p3 = scmp.ne.s32.totalorder %s29_s13, %s637_s21  ;;  %p643_p5 = scmp.lt.s32.totalorder %s637_s21, %s637_s21 }
   0xc   :  { %p644_p6 = por %p643_p5, %p642_p4 }
   0xe   :  { %p645_p7 = pnand %p644_p6, %p638_p3 }
  0x10   :  { %648 = shalt.err (!%p645_p7)
}
  0x11   :  { %s722_s22 = smov 512   ;;  %s723_s23 = smov 32  }
  0x12   :  { %34 = dma.hbm_to_vmem [thread:$0]  %s812_s1, 8192, %s29_s13, [#allocation7], %s722_s22, %s722_s22, %s723_s23  }
  0x13   :  { %s724_s26 = smov [#allocation3]   ;;  %s649_s30 = scalar_lea.hbm %s811_s0, 256 }
  0x14   :  { %s16_s27 = sshll.u32 %s724_s26, 4  ;;  %p650_p8 = scmp.ne.s32.totalorder %s811_s0, %s649_s30  ;;  %s17_s27 = int_to_ptr.vmem [resolvable:$true] %s16_s27 }
  0x15   :  { %p653_p9 = scmp.lt.u32.totalorder %s649_s30, %s811_s0 }
  0x17   :  { %p655_p10 = pnand %p653_p9, %p650_p8 }
  0x19   :  { %658 = shalt.err (!%p655_p10)
}
  0x1a   :  { %s659_s8 = scalar_lea.vmem %s17_s27, 256  ;;  %p664_p12 = scmp.lt.s32.totalorder %s17_s27, %s17_s27 }
  0x1b   :  { %p660_p11 = scmp.ne.s32.totalorder %s17_s27, %s659_s8  ;;  %p665_p13 = scmp.lt.s32.totalorder %s659_s8, %s659_s8 }
  0x1d   :  { %p666_p0 = por %p665_p13, %p664_p12 }
  0x1f   :  { %p667_p1 = pnand %p666_p0, %p660_p11 }
  0x21   :  { %670 = shalt.err (!%p667_p1)
}
  0x22   :  { %s725_s1 = smov 128   ;;  %s726_s9 = smov 8  }
  0x23   :  { %22 = dma.hbm_to_vmem [thread:$0]  %s811_s0, 256, %s17_s27, [#allocation4], %s725_s1, %s725_s1, %s726_s9  }
  0x24   :  { %s727_s12 = smov [#allocation8]   ;;  %s671_s16 = scalar_lea.hbm %s813_s2, 4096 }
  0x25   :  { %s40_s13 = sshll.u32 %s727_s12, 4  ;;  %p672_p2 = scmp.ne.s32.totalorder %s813_s2, %s671_s16  ;;  %s41_s13 = int_to_ptr.vmem [resolvable:$true] %s40_s13 }
  0x26   :  { %p675_p3 = scmp.lt.u32.totalorder %s671_s16, %s813_s2 }
  0x28   :  { %p677_p4 = pnand %p675_p3, %p672_p2 }
  0x2a   :  { %680 = shalt.err (!%p677_p4)
}
  0x2b   :  { %s681_s21 = scalar_lea.vmem %s41_s13, 4096  ;;  %p686_p6 = scmp.lt.s32.totalorder %s41_s13, %s41_s13 }
  0x2c   :  { %p682_p5 = scmp.ne.s32.totalorder %s41_s13, %s681_s21  ;;  %p687_p7 = scmp.lt.s32.totalorder %s681_s21, %s681_s21 }
  0x2e   :  { %p688_p8 = por %p687_p7, %p686_p6 }
  0x30   :  { %p689_p9 = pnand %p688_p8, %p682_p5 }
  0x32   :  { %692 = shalt.err (!%p689_p9)
}
  0x33   :  { %46 = dma.hbm_to_vmem [thread:$0]  %s813_s2, 4096, %s41_s13, [#allocation7], %s725_s1, %s725_s1, %s726_s9  }
  0x34   :  { %715 = dma.done.wait [#allocation4], 256  }
  0x35   :  { %716 = vsyncadd [#allocation4], 4294967040 }
  0x36   :  { %717 = dma.done.wait [#allocation7], 12288  }
  0x37   :  { %718 = vsyncadd [#allocation7], 4294955008  ;;  %v728_v0 = vmov 0.0   ;;  %v65_v1 = vld [vmem:[#allocation6 + $0x8] sm:$0xff]  ;;  %v64_v3 = vld [vmem:[#allocation6] sm:$0xff]  ;;  %s729_s2 = smov [#allocation9]  }
  0x38   :  { %192 = vmatprep.mubr.f32.mxu0 %v728_v0  ;;  %269 = vmatprep.mubr.f32.mxu1 %v728_v0  ;;  %v69_v2 = vld [vmem:[#allocation6 + $0x28] sm:$0xff]  ;;  %v68_v5 = vld [vmem:[#allocation6 + $0x20] sm:$0xff]  ;;  %v67_v26 = vld [vmem:[#allocation6 + $0x18] sm:$0xff]  ;;  %s439_s23 = sshll.u32 %s729_s2, 4  ;;  %s440_s23 = int_to_ptr.vmem [resolvable:$true] %s439_s23 }
  0x39   :  { %v490_v4 = vpack.c.bf16 %v69_v2, %v65_v1  ;;  %v73_v6 = vld [vmem:[#allocation6 + $0x48] sm:$0xff]  ;;  %v492_v8 = vpack.c.bf16 %v68_v5, %v64_v3  ;;  %v72_v10 = vld [vmem:[#allocation6 + $0x40] sm:$0xff]  ;;  %v71_v28 = vld [vmem:[#allocation6 + $0x38] sm:$0xff]  ;;  %s693_s24 = scalar_lea.vmem %s440_s23, 256  ;;  %p698_p11 = scmp.lt.s32.totalorder %s440_s23, %s440_s23 }
  0x3a   :  { %v77_v7 = vld [vmem:[#allocation6 + $0x68] sm:$0xff]  ;;  %v76_v11 = vld [vmem:[#allocation6 + $0x60] sm:$0xff]  ;;  %v66_v29 = vld [vmem:[#allocation6 + $0x10] sm:$0xff]  ;;  %v522_v33 = vpack.c.bf16 %v71_v28, %v67_v26  ;;  %p694_p10 = scmp.ne.s32.totalorder %s440_s23, %s693_s24  ;;  %p699_p12 = scmp.lt.s32.totalorder %s693_s24, %s693_s24 }
  0x3b   :  { %v494_v9 = vpack.c.bf16 %v77_v7, %v73_v6  ;;  %v81_v12 = vld [vmem:[#allocation6 + $0x88] sm:$0xff]  ;;  %491 = vmatprep.subr.bf16.mxu0 %v490_v4  ;;  %v496_v14 = vpack.c.bf16 %v76_v11, %v72_v10  ;;  %v80_v16 = vld [vmem:[#allocation6 + $0x80] sm:$0xff]  ;;  %v70_v30 = vld [vmem:[#allocation6 + $0x30] sm:$0xff] }
  0x3c   :  { %v85_v13 = vld [vmem:[#allocation6 + $0xa8] sm:$0xff]  ;;  %493 = vmatpush1.bf16.msra.mxu0 %v492_v8  ;;  %v84_v17 = vld [vmem:[#allocation6 + $0xa0] sm:$0xff]  ;;  %v524_v34 = vpack.c.bf16 %v70_v30, %v66_v29  ;;  %v75_v35 = vld [vmem:[#allocation6 + $0x58] sm:$0xff]  ;;  %523 = vmatprep.subr.bf16.mxu1 %v522_v33  ;;  %p700_p13 = por %p699_p12, %p698_p11 }
  0x3d   :  { %495 = vmatprep.subr.bf16.mxu0 %v494_v9  ;;  %v498_v15 = vpack.c.bf16 %v85_v13, %v81_v12  ;;  %v89_v18 = vld [vmem:[#allocation6 + $0xc8] sm:$0xff]  ;;  %v500_v20 = vpack.c.bf16 %v84_v17, %v80_v16  ;;  %v88_v22 = vld [vmem:[#allocation6 + $0xc0] sm:$0xff]  ;;  %v79_v36 = vld [vmem:[#allocation6 + $0x78] sm:$0xff] }
  0x3e   :  { %v93_v19 = vld [vmem:[#allocation6 + $0xe8] sm:$0xff]  ;;  %v92_v23 = vld [vmem:[#allocation6 + $0xe0] sm:$0xff]  ;;  %v526_v39 = vpack.c.bf16 %v79_v36, %v75_v35  ;;  %v74_v40 = vld [vmem:[#allocation6 + $0x50] sm:$0xff]  ;;  %525 = vmatpush1.bf16.msra.mxu1 %v524_v34  ;;  %p701_p0 = pnand %p700_p13, %p694_p10 }
  0x3f   :  { %v502_v21 = vpack.c.bf16 %v93_v19, %v89_v18  ;;  %v97_v24 = vld [vmem:[#allocation6 + $0x108] sm:$0xff]  ;;  %v96_v27 = vld [vmem:[#allocation6 + $0x100] sm:$0xff]  ;;  %v504_v31 = vpack.c.bf16 %v92_v23, %v88_v22  ;;  %v78_v41 = vld [vmem:[#allocation6 + $0x70] sm:$0xff] }
  0x40   :  { %497 = vmatpush1.bf16.msra.mxu0 %v496_v14  ;;  %v101_v25 = vld [vmem:[#allocation6 + $0x128] sm:$0xff]  ;;  %v100_v32 = vld [vmem:[#allocation6 + $0x120] sm:$0xff]  ;;  %v83_v43 = vld [vmem:[#allocation6 + $0x98] sm:$0xff]  ;;  %v528_v45 = vpack.c.bf16 %v78_v41, %v74_v40  ;;  %527 = vmatprep.subr.bf16.mxu1 %v526_v39 }
  0x41   :  { %499 = vmatprep.subr.bf16.mxu0 %v498_v15  ;;  %v506_v37 = vpack.c.bf16 %v101_v25, %v97_v24  ;;  %v105_v38 = vld [vmem:[#allocation6 + $0x148] sm:$0xff]  ;;  %v87_v44 = vld [vmem:[#allocation6 + $0xb8] sm:$0xff]  ;;  %v508_v46 = vpack.c.bf16 %v100_v32, %v96_v27  ;;  %v104_v47 = vld [vmem:[#allocation6 + $0x140] sm:$0xff] }
  0x42   :  { %v109_v42 = vld [vmem:[#allocation6 + $0x168] sm:$0xff]  ;;  %v530_v48 = vpack.c.bf16 %v87_v44, %v83_v43  ;;  %v82_v49 = vld [vmem:[#allocation6 + $0x90] sm:$0xff]  ;;  %v108_v52 = vld [vmem:[#allocation6 + $0x160] sm:$0xff]  ;;  %529 = vmatpush1.bf16.msra.mxu1 %v528_v45 }
  0x43   :  { %v86_v50 = vld [vmem:[#allocation6 + $0xb0] sm:$0xff]  ;;  %v510_v51 = vpack.c.bf16 %v109_v42, %v105_v38  ;;  %v91_v53 = vld [vmem:[#allocation6 + $0xd8] sm:$0xff]  ;;  %v113_v55 = vld [vmem:[#allocation6 + $0x188] sm:$0xff]  ;;  %v512_v58 = vpack.c.bf16 %v108_v52, %v104_v47 }
  0x44   :  { %501 = vmatpush1.bf16.msra.mxu0 %v500_v20  ;;  %v95_v54 = vld [vmem:[#allocation6 + $0xf8] sm:$0xff]  ;;  %v117_v56 = vld [vmem:[#allocation6 + $0x1a8] sm:$0xff]  ;;  %v532_v57 = vpack.c.bf16 %v86_v50, %v82_v49  ;;  %v112_v59 = vld [vmem:[#allocation6 + $0x180] sm:$0xff]  ;;  %531 = vmatprep.subr.bf16.mxu1 %v530_v48 }
  0x45   :  { %503 = vmatprep.subr.bf16.mxu0 %v502_v21  ;;  %v534_v60 = vpack.c.bf16 %v95_v54, %v91_v53  ;;  %v90_v61 = vld [vmem:[#allocation6 + $0xd0] sm:$0xff]  ;;  %v514_v63 = vpack.c.bf16 %v117_v56, %v113_v55  ;;  %v116_v1 = vld [vmem:[#allocation6 + $0x1a0] sm:$0xff]  ;;  %v99_v2 = vld [vmem:[#allocation6 + $0x118] sm:$0xff] }
  0x46   :  { %v94_v62 = vld [vmem:[#allocation6 + $0xf0] sm:$0xff]  ;;  %v103_v3 = vld [vmem:[#allocation6 + $0x138] sm:$0xff]  ;;  %v121_v4 = vld [vmem:[#allocation6 + $0x1c8] sm:$0xff]  ;;  %533 = vmatpush1.bf16.msra.mxu1 %v532_v57  ;;  %v516_v7 = vpack.c.bf16 %v116_v1, %v112_v59 }
  0x47   :  { %v125_v5 = vld [vmem:[#allocation6 + $0x1e8] sm:$0xff]  ;;  %v536_v6 = vpack.c.bf16 %v94_v62, %v90_v61  ;;  %v120_v8 = vld [vmem:[#allocation6 + $0x1c0] sm:$0xff]  ;;  %535 = vmatprep.subr.bf16.mxu1 %v534_v60  ;;  %v538_v9 = vpack.c.bf16 %v103_v3, %v99_v2  ;;  %v98_v10 = vld [vmem:[#allocation6 + $0x110] sm:$0xff] }
  0x48   :  { %505 = vmatpush1.bf16.msra.mxu0 %v504_v31  ;;  %v102_v11 = vld [vmem:[#allocation6 + $0x130] sm:$0xff]  ;;  %v518_v12 = vpack.c.bf16 %v125_v5, %v121_v4  ;;  %v124_v13 = vld [vmem:[#allocation6 + $0x1e0] sm:$0xff]  ;;  %v107_v14 = vld [vmem:[#allocation6 + $0x158] sm:$0xff] }
  0x49   :  { %507 = vmatprep.subr.bf16.mxu0 %v506_v37  ;;  %v111_v15 = vld [vmem:[#allocation6 + $0x178] sm:$0xff]  ;;  %v540_v16 = vpack.c.bf16 %v102_v11, %v98_v10  ;;  %v520_v17 = vpack.c.bf16 %v124_v13, %v120_v8  ;;  %v106_v19 = vld [vmem:[#allocation6 + $0x150] sm:$0xff]  ;;  %v332_v36 = vld [vmem:[#allocation8 + $0x80] sm:$0xff] }
  0x4a   :  { %537 = vmatpush1.bf16.msra.mxu1 %v536_v6  ;;  %v542_v18 = vpack.c.bf16 %v111_v15, %v107_v14  ;;  %v110_v20 = vld [vmem:[#allocation6 + $0x170] sm:$0xff]  ;;  %v115_v21 = vld [vmem:[#allocation6 + $0x198] sm:$0xff]  ;;  %v333_v37 = vld [vmem:[#allocation8 + $0x88] sm:$0xff] }
  0x4b   :  { %539 = vmatprep.subr.bf16.mxu1 %v538_v9  ;;  %v119_v22 = vld [vmem:[#allocation6 + $0x1b8] sm:$0xff]  ;;  %v544_v23 = vpack.c.bf16 %v110_v20, %v106_v19  ;;  %v62_v24 = vld [vmem:[#allocation3] sm:$0xff]  ;;  %v554_v38 = vpack.c.bf16 %v333_v37, %v332_v36  ;;  %v316_v39 = vld [vmem:[#allocation8] sm:$0xff] }
  0x4c   :  { %509 = vmatpush1.bf16.msra.mxu0 %v508_v46  ;;  %v546_v25 = vpack.c.bf16 %v119_v22, %v115_v21  ;;  %v114_v26 = vld [vmem:[#allocation6 + $0x190] sm:$0xff]  ;;  %v123_v28 = vld [vmem:[#allocation6 + $0x1d8] sm:$0xff]  ;;  %v317_v40 = vld [vmem:[#allocation8 + $0x8] sm:$0xff] }
  0x4d   :  { %511 = vmatprep.subr.bf16.mxu0 %v510_v51  ;;  %v118_v27 = vld [vmem:[#allocation6 + $0x1b0] sm:$0xff]  ;;  %v127_v29 = vld [vmem:[#allocation6 + $0x1f8] sm:$0xff]  ;;  %v556_v41 = vpack.c.bf16 %v317_v40, %v316_v39  ;;  %v337_v48 = vld [vmem:[#allocation8 + $0xa8] sm:$0xff] }
  0x4e   :  { %541 = vmatpush1.bf16.msra.mxu1 %v540_v16  ;;  %v548_v30 = vpack.c.bf16 %v118_v27, %v114_v26  ;;  %v63_v31 = vld [vmem:[#allocation3 + $0x8] sm:$0xff]  ;;  %v550_v32 = vpack.c.bf16 %v127_v29, %v123_v28  ;;  %v122_v33 = vld [vmem:[#allocation6 + $0x1d0] sm:$0xff]  ;;  %v320_v50 = vld [vmem:[#allocation8 + $0x20] sm:$0xff] }
  0x4f   :  { %543 = vmatprep.subr.bf16.mxu1 %v542_v18  ;;  %v126_v34 = vld [vmem:[#allocation6 + $0x1f0] sm:$0xff]  ;;  %v335_v43 = vld [vmem:[#allocation8 + $0x98] sm:$0xff]  ;;  %v321_v51 = vld [vmem:[#allocation8 + $0x28] sm:$0xff] }
  0x50   :  { %513 = vmatpush1.bf16.msra.mxu0 %v512_v58  ;;  %v552_v35 = vpack.c.bf16 %v126_v34, %v122_v33  ;;  %v334_v42 = vld [vmem:[#allocation8 + $0x90] sm:$0xff]  ;;  %v319_v46 = vld [vmem:[#allocation8 + $0x18] sm:$0xff]  ;;  %v564_v52 = vpack.c.bf16 %v321_v51, %v320_v50  ;;  %v340_v59 = vld [vmem:[#allocation8 + $0xc0] sm:$0xff] }
  0x51   :  { %515 = vmatprep.subr.bf16.mxu0 %v514_v63  ;;  %v558_v44 = vpack.c.bf16 %v335_v43, %v334_v42  ;;  %v318_v45 = vld [vmem:[#allocation8 + $0x10] sm:$0xff]  ;;  %v339_v54 = vld [vmem:[#allocation8 + $0xb8] sm:$0xff]  ;;  %v341_v60 = vld [vmem:[#allocation8 + $0xc8] sm:$0xff] }
  0x52   :  { %545 = vmatpush1.bf16.msra.mxu1 %v544_v23  ;;  %v560_v47 = vpack.c.bf16 %v319_v46, %v318_v45  ;;  %v338_v53 = vld [vmem:[#allocation8 + $0xb0] sm:$0xff]  ;;  %v323_v57 = vld [vmem:[#allocation8 + $0x38] sm:$0xff]  ;;  %v570_v61 = vpack.c.bf16 %v341_v60, %v340_v59  ;;  %v324_v62 = vld [vmem:[#allocation8 + $0x40] sm:$0xff] }
  0x53   :  { %547 = vmatprep.subr.bf16.mxu1 %v546_v25  ;;  %v566_v55 = vpack.c.bf16 %v339_v54, %v338_v53  ;;  %v322_v56 = vld [vmem:[#allocation8 + $0x30] sm:$0xff]  ;;  %v325_v63 = vld [vmem:[#allocation8 + $0x48] sm:$0xff]  ;;  %v343_v3 = vld [vmem:[#allocation8 + $0xd8] sm:$0xff] }
  0x54   :  { %517 = vmatpush1.bf16.msra.mxu0 %v516_v7  ;;  %v568_v58 = vpack.c.bf16 %v323_v57, %v322_v56  ;;  %v572_v1 = vpack.c.bf16 %v325_v63, %v324_v62  ;;  %v342_v2 = vld [vmem:[#allocation8 + $0xd0] sm:$0xff]  ;;  %v327_v6 = vld [vmem:[#allocation8 + $0x58] sm:$0xff]  ;;  %v344_v8 = vld [vmem:[#allocation8 + $0xe0] sm:$0xff] }
  0x55   :  { %519 = vmatprep.subr.bf16.mxu0 %v518_v12  ;;  %v574_v4 = vpack.c.bf16 %v343_v3, %v342_v2  ;;  %v326_v5 = vld [vmem:[#allocation8 + $0x50] sm:$0xff]  ;;  %v345_v9 = vld [vmem:[#allocation8 + $0xe8] sm:$0xff]  ;;  %v328_v11 = vld [vmem:[#allocation8 + $0x60] sm:$0xff] }
  0x56   :  { %549 = vmatpush1.bf16.msra.mxu1 %v548_v30  ;;  %v576_v7 = vpack.c.bf16 %v327_v6, %v326_v5  ;;  %v578_v10 = vpack.c.bf16 %v345_v9, %v344_v8  ;;  %v329_v12 = vld [vmem:[#allocation8 + $0x68] sm:$0xff]  ;;  %v346_v14 = vld [vmem:[#allocation8 + $0xf0] sm:$0xff]  ;;  %v347_v15 = vld [vmem:[#allocation8 + $0xf8] sm:$0xff] }
  0x57   :  { %551 = vmatprep.subr.bf16.mxu1 %v550_v32  ;;  %v580_v13 = vpack.c.bf16 %v329_v12, %v328_v11  ;;  %v582_v16 = vpack.c.bf16 %v347_v15, %v346_v14  ;;  %v331_v18 = vld [vmem:[#allocation8 + $0x78] sm:$0xff] }
  0x58   :  { %521 = vmatpush1.bf16.msra.mxu0 %v520_v17  ;;  %v330_v17 = vld [vmem:[#allocation8 + $0x70] sm:$0xff] }
  0x59   :  { %555 = vmatprep.subr.bf16.mxu0 %v554_v38  ;;  %v584_v19 = vpack.c.bf16 %v331_v18, %v330_v17 }
  0x5a   :  { %553 = vmatpush1.bf16.msra.mxu1 %v552_v35 }
  0x5b   :  { %193 = vmatmul.mubr.f32.vlgmr.msra.gmra.mrb[0].mxu0 %v62_v24  ;;  %586 = vmatprep.subr.bf16.mxu1 %v554_v38 }
  0x5c   :  { %198 = vmatprep.mubr.f32.mxu0 %v728_v0  ;;  %557 = vmatpush3.bf16.msra.mxu0 %v556_v41 }
  0x5d   :  { %270 = vmatmul.mubr.f32.vlgmr.msra.gmra.mrb[0].mxu1 %v62_v24  ;;  %559 = vmatprep.subr.bf16.mxu0 %v558_v44 }
  0x5e   :  { %275 = vmatprep.mubr.f32.mxu1 %v728_v0  ;;  %594 = vmatpush3.bf16.msra.mxu1 %v556_v41  ;;  %v336_v0 = vld [vmem:[#allocation8 + $0xa0] sm:$0xff] }
  0x5f   :  { %199 = vmatmul.mubr.f32.gmra.mrb[2].mxu0 %v63_v31  ;;  %587 = vmatprep.subr.bf16.mxu1 %v558_v44  ;;  %v562_v49 = vpack.c.bf16 %v337_v48, %v336_v0 }
  0x60   :  { %561 = vmatpush3.bf16.msra.mxu0 %v560_v47 }
  0x61   :  { %276 = vmatmul.mubr.f32.gmra.mrb[2].mxu1 %v63_v31  ;;  %563 = vmatprep.subr.bf16.mxu0 %v562_v49 }
  0x62   :  { %595 = vmatpush3.bf16.msra.mxu1 %v560_v47 }
  0x63   :  { %588 = vmatprep.subr.bf16.mxu1 %v562_v49 }
  0x64   :  { %565 = vmatpush3.bf16.msra.mxu0 %v564_v52 }
  0x65   :  { %567 = vmatprep.subr.bf16.mxu0 %v566_v55 }
  0x66   :  { %596 = vmatpush3.bf16.msra.mxu1 %v564_v52 }
  0x67   :  { %589 = vmatprep.subr.bf16.mxu1 %v566_v55 }
  0x68   :  { %569 = vmatpush3.bf16.msra.mxu0 %v568_v58 }
  0x69   :  { %571 = vmatprep.subr.bf16.mxu0 %v570_v61 }
  0x6a   :  { %597 = vmatpush3.bf16.msra.mxu1 %v568_v58 }
  0x6b   :  { %590 = vmatprep.subr.bf16.mxu1 %v570_v61 }
  0x6c   :  { %573 = vmatpush3.bf16.msra.mxu0 %v572_v1 }
  0x6d   :  { %575 = vmatprep.subr.bf16.mxu0 %v574_v4 }
  0x6e   :  { %598 = vmatpush3.bf16.msra.mxu1 %v572_v1 }
  0x6f   :  { %591 = vmatprep.subr.bf16.mxu1 %v574_v4 }
  0x70   :  { %577 = vmatpush3.bf16.msra.mxu0 %v576_v7 }
  0x71   :  { %579 = vmatprep.subr.bf16.mxu0 %v578_v10 }
  0x72   :  { %599 = vmatpush3.bf16.msra.mxu1 %v576_v7 }
  0x73   :  { %592 = vmatprep.subr.bf16.mxu1 %v578_v10 }
  0x74   :  { %581 = vmatpush3.bf16.msra.mxu0 %v580_v13 }
  0x75   :  { %583 = vmatprep.subr.bf16.mxu0 %v582_v16 }
  0x76   :  { %600 = vmatpush3.bf16.msra.mxu1 %v580_v13 }
  0x77   :  { %593 = vmatprep.subr.bf16.mxu1 %v582_v16 }
  0x78   :  { %585 = vmatpush3.bf16.msra.mxu0 %v584_v19 }
  0x7a   :  { %601 = vmatpush3.bf16.msra.mxu1 %v584_v19 }
 0x12e   :  { %v194_v20 = vpop.f32.mrb[0].mxu0 }
 0x12f   :  { %v282_v21 = vsub.f32 0.0, %v194_v20  ;;  %v196_v22 = vpop.f32.mrb[1].mxu0 }
 0x130   :  { %v283_v23 = vsub.f32 0.0, %v196_v22  ;;  %v271_v32 = vpop.f32.mrb[0].mxu1 }
 0x131   :  { %v286_v24 = vmul.f32 1.442695, %v282_v21  ;;  %v273_v33 = vpop.f32.mrb[1].mxu1 }
 0x132   :  { %v288_v25 = vmul.f32 1.442695, %v283_v23  ;;  %v200_v26 = vpop.f32.mrb[2].mxu0 }
 0x133   :  { %611 = vpow2.f32 %v286_v24  ;;  %v284_v27 = vsub.f32 0.0, %v200_v26  ;;  %v202_v28 = vpop.f32.mrb[3].mxu0 }
 0x134   :  { %613 = vpow2.f32 %v288_v25  ;;  %v285_v29 = vsub.f32 0.0, %v202_v28  ;;  %v277_v35 = vpop.f32.mrb[2].mxu1 }
 0x135   :  { %v290_v30 = vmul.f32 1.442695, %v284_v27  ;;  %v279_v38 = vpop.f32.mrb[3].mxu1 }
 0x136   :  { %v292_v31 = vmul.f32 1.442695, %v285_v29 }
 0x137   :  { %615 = vpow2.f32 %v290_v30 }
 0x138   :  { %617 = vpow2.f32 %v292_v31 }
 0x13d   :  { %v612_v34 = vpop.eup %611 }
 0x13e   :  { %v614_v36 = vpop.eup %613  ;;  %v294_v37 = vadd.f32 1.0, %v612_v34 }
 0x13f   :  { %v295_v39 = vadd.f32 1.0, %v614_v36 }
 0x140   :  { %619 = vrcp.f32 %v294_v37 }
 0x141   :  { %v616_v40 = vpop.eup %615  ;;  %621 = vrcp.f32 %v295_v39 }
 0x142   :  { %v618_v41 = vpop.eup %617  ;;  %v296_v42 = vadd.f32 1.0, %v616_v40 }
 0x143   :  { %v297_v43 = vadd.f32 1.0, %v618_v41 }
 0x144   :  { %623 = vrcp.f32 %v296_v42 }
 0x145   :  { %625 = vrcp.f32 %v297_v43 }
 0x14a   :  { %v620_v44 = vpop.eup %619 }
 0x14b   :  { %v622_v45 = vpop.eup %621  ;;  %v306_v46 = vmul.f32 %v620_v44, %v194_v20 }
 0x14c   :  { %v307_v47 = vmul.f32 %v622_v45, %v196_v22 }
 0x14d   :  { %v310_v0 = vmul.f32 %v306_v46, %v271_v32 }
 0x14e   :  { %v624_v48 = vpop.eup %623  ;;  %v311_v49 = vmul.f32 %v307_v47, %v273_v33 }
 0x14f   :  { %v626_v50 = vpop.eup %625  ;;  %v308_v51 = vmul.f32 %v624_v48, %v200_v26 }
 0x150   :  { %v309_v52 = vmul.f32 %v626_v50, %v202_v28  ;;  %412 = vmatprep.mubr.f32.mxu0 %v311_v49 }
 0x151   :  { %v312_v53 = vmul.f32 %v308_v51, %v277_v35  ;;  %413 = vmatmul.mubr.f32.vlgmr.msra.gmra.mrb[4].mxu0 %v310_v0 }
 0x152   :  { %v313_v54 = vmul.f32 %v309_v52, %v279_v38 }
 0x154   :  { %417 = vmatprep.mubr.f32.mxu1 %v313_v54 }
 0x155   :  { %418 = vmatmul.mubr.f32.vlgmr.msra.gmra.mrb[4].mxu1 %v312_v53 }
 0x224   :  { %v484_v55 = vpop.f32.mrb[4].mxu0 }
 0x225   :  { %v485_v56 = vpop.f32.mrb[5].mxu0 }
 0x226   :  { %v486_v57 = vadd.f32 %v485_v56, %v484_v55 }
 0x228   :  { %432 = vst [vmem:[#allocation9] sm:$0xff] %v486_v57  ;;  %v487_v58 = vpop.f32.mrb[4].mxu1 }
 0x229   :  { %v488_v59 = vpop.f32.mrb[5].mxu1 }
 0x22a   :  { %v489_v60 = vadd.f32 %v488_v59, %v487_v58 }
 0x22c   :  { %433 = vst [vmem:[#allocation9 + $0x8] sm:$0xff] %v489_v60 }
 0x22d   :  { %704 = shalt.err (!%p701_p0)
}
 0x22e   :  { %s705_s27 = scalar_lea.hbm %s814_s3, 256 }
 0x22f   :  { %p706_p1 = scmp.ne.s32.totalorder %s814_s3, %s705_s27  ;;  %p709_p2 = scmp.lt.u32.totalorder %s705_s27, %s814_s3 }
 0x231   :  { %p711_p3 = pnand %p709_p2, %p706_p1 }
 0x233   :  { %714 = shalt.err (!%p711_p3)
}
 0x234   :  { %445 = dma.vmem_to_hbm [thread:$0]  %s440_s23, 256, %s814_s3, [#allocation5], %s725_s1, %s725_s1, %s726_s9  }
 0x235   :  { %719 = dma.done.wait [#allocation5], 256  }
 0x236   :  { %720 = vsyncadd [#allocation5], 4294967040 }
 0x237   :  { %449 = vsyncpa [#allocation4], 1 }
 0x238   :  { %450 = vsyncpa [#allocation7], 1 }
 0x239   :  { %451 = vsyncpa [#allocation5], 1 }

</bundles_post_ra>
